<compile_context>
chip_gen: v7x
topology: tpu7x:2x2x1
jax: 0.10.0
libtpu: 0.0.40
codegen_flags: <defaults>
</compile_context>

<pallas_src>
import math

import numpy as np
import jax
import jax.numpy as jnp
from jax.experimental import pallas as pl
from jax.experimental.pallas import tpu as pltpu

_EPS = 1e-4          # the 0.0001 used by RGB2HSV in the PyTorch module
_LANE = 128


def _largest_divisor_leq(n, cap):
    cap = max(1, min(n, cap))
    for d in range(cap, 0, -1):
        if n % d == 0:
            return d
    return 1


def _newton_recip(d):
    """1/d via EUP approx reciprocal + one Newton refinement step."""
    r = pl.reciprocal(d, approx=True)
    return r * (2.0 - d * r)


def _hsv_term(r, g, b, use_cos):
    """RGB2HSV followed by cos/sin(2*pi*H) * S * V, elementwise."""
    v = jnp.maximum(jnp.maximum(r, g), b)        # torch.max over channel
    mn = jnp.minimum(jnp.minimum(r, g), b)       # torch.min over channel
    delta = v - mn
    inv_v = _newton_recip(v + _EPS)
    inv_d = _newton_recip(delta + _EPS)
    s = delta * inv_v

    # argmax over channels with first-max tie-breaking (== jnp.argmax)
    mark0 = jnp.logical_and(r >= g, r >= b)                  # max_index == 0
    mark1 = jnp.logical_and(jnp.logical_not(mark0), g >= b)  # max_index == 1

    h0 = 60.0 * (g - b) * inv_d
    h1 = 120.0 + 60.0 * (b - r) * inv_d
    h2 = 240.0 + 60.0 * (r - g) * inv_d
    h = jnp.where(mark0, h0, jnp.where(mark1, h1, h2))
    h = jnp.where(h < 0.0, h + 360.0, h)
    # h is now in [0, 360): the torch `% 360` is a no-op, so it is dropped;
    # (h / 360) * 2*pi folded into a single multiply by pi/180.
    ang = h * (math.pi / 180.0)
    trig = jnp.cos(ang) if use_cos else jnp.sin(ang)
    return trig * s * v


def _hsv_loss_kernel(pr_ref, pg_ref, pb_ref, gr_ref, gg_ref, gb_ref, out_ref):
    # Each ref is a dense (TB, TP, 128) single-channel slab in native dtype.
    pr = pr_ref[...].astype(jnp.float32)
    pg = pg_ref[...].astype(jnp.float32)
    pb = pb_ref[...].astype(jnp.float32)
    gr = gr_ref[...].astype(jnp.float32)
    gg = gg_ref[...].astype(jnp.float32)
    gb = gb_ref[...].astype(jnp.float32)

    t_pred = _hsv_term(pr, pg, pb, use_cos=True)
    t_gt = _hsv_term(gr, gg, gb, use_cos=False)
    diff = jnp.abs(t_pred - t_gt)                      # (TB, TP, 128)

    tb, tp, lane = diff.shape
    if tp % 8 == 0:
        # Metadata-only reshape (TP multiple of 8 -> tile-aligned); summing the
        # leading axis is pure cross-vreg VPU adds -> (8, 128) vector partial.
        part = jnp.sum(diff.reshape(tb * tp // 8, 8, lane), axis=0)
    else:
        # Tiny/odd blocks: scalar sum, spread over the tile so the wrapper's
        # full-array sum still yields the exact block contribution.
        part = jnp.broadcast_to(jnp.sum(diff) * (1.0 / (8.0 * lane)), (8, lane))
    out_ref[...] = part.reshape(out_ref.shape)


def hsv_loss(pred, gt):
    """Pallas implementation of HSVLoss.forward(pred, gt)."""
    if pred.shape != gt.shape:
        raise ValueError("pred and gt must have the same shape.")
    B, C, H, W = pred.shape
    if C != 3:
        raise ValueError("HSVLoss expects 3-channel RGB inputs.")
    HW = H * W
    itemsize = jnp.dtype(pred.dtype).itemsize

    # ~0.75-1.5 MiB of input DMA per tensor per grid step.
    target_rows = 512 if itemsize >= 4 else 1024

    pf = pred.reshape(B, 3, HW)
    gf = gt.reshape(B, 3, HW)

    # Pad pixels to whole 128-lane rows (zero RGB pixels contribute exactly 0).
    HWp = -(-HW // _LANE) * _LANE
    if HWp != HW:
        pf = jnp.pad(pf, ((0, 0), (0, 0), (0, HWp - HW)))
        gf = jnp.pad(gf, ((0, 0), (0, 0), (0, HWp - HW)))
    P = HWp // _LANE

    if P <= target_rows:
        TP = P
        TB = _largest_divisor_leq(B, max(1, target_rows // max(P, 1)))
    else:
        TB = 1
        TP = 0
        t = (target_rows // 8) * 8
        while t >= 64:                       # multiple of 8 that divides P
            if P % t == 0:
                TP = t
                break
            t -= 8
        if TP == 0:                          # rare shapes: pad the pixel rows
            TP = target_rows
            Pp = -(-P // TP) * TP
            pf = jnp.pad(pf, ((0, 0), (0, 0), (0, (Pp - P) * _LANE)))
            gf = jnp.pad(gf, ((0, 0), (0, 0), (0, (Pp - P) * _LANE)))
            P = Pp

    gB, gP = B // TB, P // TP
    # v7x megacore: keep >= 2 grid steps when it is free to do so.
    if gB * gP == 1:
        if TP % 16 == 0:
            TP //= 2
        elif TB > 1:
            TB = _largest_divisor_leq(B, TB - 1)
        gB, gP = B // TB, P // TP

    # Free metadata reshape: pixels occupy both sublane and lane axes.
    pf = pf.reshape(B, 3, P, _LANE)
    gf = gf.reshape(B, 3, P, _LANE)

    def cspec(c):
        # Channel axis squeezed out -> kernel sees a dense (TB, TP, 128) slab.
        return pl.BlockSpec((TB, None, TP, _LANE),
                            lambda i, j, c=c: (i, c, j, 0))

    in_specs = [cspec(0), cspec(1), cspec(2), cspec(0), cspec(1), cspec(2)]
    out_specs = pl.BlockSpec((1, 1, 8, _LANE), lambda i, j: (i, j, 0, 0))

    n_px = B * P * _LANE
    cost = pl.CostEstimate(
        flops=int(120 * n_px),
        transcendentals=int(6 * n_px),
        bytes_accessed=int(2 * 3 * n_px * itemsize + gB * gP * 8 * _LANE * 4),
    )

    partials = pl.pallas_call(
        _hsv_loss_kernel,
        out_shape=jax.ShapeDtypeStruct((gB, gP, 8, _LANE), jnp.float32),
        grid_spec=pltpu.PrefetchScalarGridSpec(
            num_scalar_prefetch=0,
            grid=(gB, gP),
            in_specs=in_specs,
            out_specs=out_specs,
        ),
        compiler_params=pltpu.CompilerParams(
            dimension_semantics=("parallel", "parallel"),
            vmem_limit_bytes=32 * 1024 * 1024,
        ),
        cost_estimate=cost,
    )(pf, pf, pf, gf, gf, gf)

    return jnp.sum(partials) / jnp.float32(B * HW)


def _hsv_loss_ref(pred, gt):
    """Pure-JAX reference mirroring the PyTorch HSVLoss/RGB2HSV modules."""

    def rgb2hsv(rgb):
        rgb = rgb.astype(jnp.float32)
        r, g, b = rgb[:, 0], rgb[:, 1], rgb[:, 2]
        v = jnp.max(rgb, axis=1)
        idx = jnp.argmax(rgb, axis=1)
        mn = jnp.min(rgb, axis=1)
        delta = v - mn
        s = delta / (v + _EPS)
        h = jnp.where(idx == 0, 60.0 * (g - b) / (delta + _EPS),
            jnp.where(idx == 1, 120.0 + 60.0 * (b - r) / (delta + _EPS),
                      240.0 + 60.0 * (r - g) / (delta + _EPS)))
        h = jnp.where(h < 0.0, h + 360.0, h)
        h = h % 360.0
        h = h / 360.0
        return h, s, v

    hi, si, vi = rgb2hsv(pred)
    hj, sj, vj = rgb2hsv(gt)
    t_pred = jnp.cos(hi * 2.0 * math.pi) * si * vi
    t_gt = jnp.sin(hj * 2.0 * math.pi) * sj * vj
    # torch.add(temp_pred, -1, temp_gt) == temp_pred - temp_gt
    return jnp.mean(jnp.abs(t_pred - t_gt))


if __name__ == "__main__":
    key = jax.random.PRNGKey(0)
    k1, k2 = jax.random.split(key)
    B, C, H, W = 2, 3, 16, 16
    pred = jax.random.uniform(k1, (B, C, H, W), dtype=jnp.float32)
    gt = jax.random.uniform(k2, (B, C, H, W), dtype=jnp.float32)

    loss = jax.block_until_ready(hsv_loss(pred, gt))
    ref = jax.block_until_ready(_hsv_loss_ref(pred, gt))

    assert np.allclose(np.asarray(loss), np.asarray(ref),
                       rtol=1e-3, atol=1e-3), (loss, ref)
    print("KERNEL_OK")
</pallas_src>

<mosaic_0001>
module attributes {stable_mosaic.version = 11 : i64} {
  func.func @_hsv_loss_kernel(%arg0: i32, %arg1: i32, %arg2: memref<1x1x2x128xf32, #tpu.memory_space<vmem>>, %arg3: memref<1x1x2x128xf32, #tpu.memory_space<vmem>>, %arg4: memref<1x1x2x128xf32, #tpu.memory_space<vmem>>, %arg5: memref<1x1x2x128xf32, #tpu.memory_space<vmem>>, %arg6: memref<1x1x2x128xf32, #tpu.memory_space<vmem>>, %arg7: memref<1x1x2x128xf32, #tpu.memory_space<vmem>>, %arg8: memref<1x1x8x128xf32, #tpu.memory_space<vmem>>) attributes {dimension_semantics = [#tpu.dimension_semantics<parallel>, #tpu.dimension_semantics<parallel>], iteration_bounds = array<i64: 2, 1>, scalar_prefetch = 0 : i64, scratch_operands = 0 : i64, tpu.core_type = #tpu.core_type<tc>, window_params = [{transform_indices = @transform_0, window_bounds = array<i64: 1, 1, 2, 128>}, {transform_indices = @transform_1, window_bounds = array<i64: 1, 1, 2, 128>}, {transform_indices = @transform_2, window_bounds = array<i64: 1, 1, 2, 128>}, {transform_indices = @transform_3, window_bounds = array<i64: 1, 1, 2, 128>}, {transform_indices = @transform_4, window_bounds = array<i64: 1, 1, 2, 128>}, {transform_indices = @transform_5, window_bounds = array<i64: 1, 1, 2, 128>}, {transform_indices = @transform_6, window_bounds = array<i64: 1, 1, 8, 128>}]} {
    %c0 = arith.constant 0 : index
    %c0_0 = arith.constant 0 : index
    %c0_1 = arith.constant 0 : index
    %c0_2 = arith.constant 0 : index
    %0 = vector.load %arg2[%c0, %c0_0, %c0_1, %c0_2] : memref<1x1x2x128xf32, #tpu.memory_space<vmem>>, vector<1x1x2x128xf32>
    %1 = vector.shape_cast %0 : vector<1x1x2x128xf32> to vector<1x2x128xf32>
    %c0_3 = arith.constant 0 : index
    %c0_4 = arith.constant 0 : index
    %c0_5 = arith.constant 0 : index
    %c0_6 = arith.constant 0 : index
    %2 = vector.load %arg3[%c0_3, %c0_4, %c0_5, %c0_6] : memref<1x1x2x128xf32, #tpu.memory_space<vmem>>, vector<1x1x2x128xf32>
    %3 = vector.shape_cast %2 : vector<1x1x2x128xf32> to vector<1x2x128xf32>
    %c0_7 = arith.constant 0 : index
    %c0_8 = arith.constant 0 : index
    %c0_9 = arith.constant 0 : index
    %c0_10 = arith.constant 0 : index
    %4 = vector.load %arg4[%c0_7, %c0_8, %c0_9, %c0_10] : memref<1x1x2x128xf32, #tpu.memory_space<vmem>>, vector<1x1x2x128xf32>
    %5 = vector.shape_cast %4 : vector<1x1x2x128xf32> to vector<1x2x128xf32>
    %c0_11 = arith.constant 0 : index
    %c0_12 = arith.constant 0 : index
    %c0_13 = arith.constant 0 : index
    %c0_14 = arith.constant 0 : index
    %6 = vector.load %arg5[%c0_11, %c0_12, %c0_13, %c0_14] : memref<1x1x2x128xf32, #tpu.memory_space<vmem>>, vector<1x1x2x128xf32>
    %7 = vector.shape_cast %6 : vector<1x1x2x128xf32> to vector<1x2x128xf32>
    %c0_15 = arith.constant 0 : index
    %c0_16 = arith.constant 0 : index
    %c0_17 = arith.constant 0 : index
    %c0_18 = arith.constant 0 : index
    %8 = vector.load %arg6[%c0_15, %c0_16, %c0_17, %c0_18] : memref<1x1x2x128xf32, #tpu.memory_space<vmem>>, vector<1x1x2x128xf32>
    %9 = vector.shape_cast %8 : vector<1x1x2x128xf32> to vector<1x2x128xf32>
    %c0_19 = arith.constant 0 : index
    %c0_20 = arith.constant 0 : index
    %c0_21 = arith.constant 0 : index
    %c0_22 = arith.constant 0 : index
    %10 = vector.load %arg7[%c0_19, %c0_20, %c0_21, %c0_22] : memref<1x1x2x128xf32, #tpu.memory_space<vmem>>, vector<1x1x2x128xf32>
    %11 = vector.shape_cast %10 : vector<1x1x2x128xf32> to vector<1x2x128xf32>
    %12 = arith.maximumf %1, %3 : vector<1x2x128xf32>
    %13 = arith.maximumf %12, %5 : vector<1x2x128xf32>
    %14 = arith.minimumf %1, %3 : vector<1x2x128xf32>
    %15 = arith.minimumf %14, %5 : vector<1x2x128xf32>
    %16 = arith.subf %13, %15 : vector<1x2x128xf32>
    %cst = arith.constant 9.99999974E-5 : f32
    %17 = vector.broadcast %cst : f32 to vector<1x2x128xf32>
    %18 = arith.addf %13, %17 : vector<1x2x128xf32>
    %19 = tpu.reciprocal %18 {approx = true} : vector<1x2x128xf32> -> vector<1x2x128xf32>
    %20 = arith.mulf %18, %19 : vector<1x2x128xf32>
    %cst_23 = arith.constant 2.000000e+00 : f32
    %21 = vector.broadcast %cst_23 : f32 to vector<1x2x128xf32>
    %22 = arith.subf %21, %20 : vector<1x2x128xf32>
    %23 = arith.mulf %19, %22 : vector<1x2x128xf32>
    %cst_24 = arith.constant 9.99999974E-5 : f32
    %24 = vector.broadcast %cst_24 : f32 to vector<1x2x128xf32>
    %25 = arith.addf %16, %24 : vector<1x2x128xf32>
    %26 = tpu.reciprocal %25 {approx = true} : vector<1x2x128xf32> -> vector<1x2x128xf32>
    %27 = arith.mulf %25, %26 : vector<1x2x128xf32>
    %cst_25 = arith.constant 2.000000e+00 : f32
    %28 = vector.broadcast %cst_25 : f32 to vector<1x2x128xf32>
    %29 = arith.subf %28, %27 : vector<1x2x128xf32>
    %30 = arith.mulf %26, %29 : vector<1x2x128xf32>
    %31 = arith.mulf %16, %23 : vector<1x2x128xf32>
    %32 = arith.cmpf oge, %1, %3 : vector<1x2x128xf32>
    %33 = arith.cmpf oge, %1, %5 : vector<1x2x128xf32>
    %34 = arith.andi %32, %33 : vector<1x2x128xi1>
    %cst_26 = arith.constant dense<true> : vector<1x2x128xi1>
    %35 = arith.xori %34, %cst_26 : vector<1x2x128xi1>
    %36 = arith.cmpf oge, %3, %5 : vector<1x2x128xf32>
    %37 = arith.andi %35, %36 : vector<1x2x128xi1>
    %38 = arith.subf %3, %5 : vector<1x2x128xf32>
    %cst_27 = arith.constant 6.000000e+01 : f32
    %39 = vector.broadcast %cst_27 : f32 to vector<1x2x128xf32>
    %40 = arith.mulf %39, %38 : vector<1x2x128xf32>
    %41 = arith.mulf %40, %30 : vector<1x2x128xf32>
    %42 = arith.subf %5, %1 : vector<1x2x128xf32>
    %cst_28 = arith.constant 6.000000e+01 : f32
    %43 = vector.broadcast %cst_28 : f32 to vector<1x2x128xf32>
    %44 = arith.mulf %43, %42 : vector<1x2x128xf32>
    %45 = arith.mulf %44, %30 : vector<1x2x128xf32>
    %cst_29 = arith.constant 1.200000e+02 : f32
    %46 = vector.broadcast %cst_29 : f32 to vector<1x2x128xf32>
    %47 = arith.addf %46, %45 : vector<1x2x128xf32>
    %48 = arith.subf %1, %3 : vector<1x2x128xf32>
    %cst_30 = arith.constant 6.000000e+01 : f32
    %49 = vector.broadcast %cst_30 : f32 to vector<1x2x128xf32>
    %50 = arith.mulf %49, %48 : vector<1x2x128xf32>
    %51 = arith.mulf %50, %30 : vector<1x2x128xf32>
    %cst_31 = arith.constant 2.400000e+02 : f32
    %52 = vector.broadcast %cst_31 : f32 to vector<1x2x128xf32>
    %53 = arith.addf %52, %51 : vector<1x2x128xf32>
    %54 = arith.select %37, %47, %53 : vector<1x2x128xi1>, vector<1x2x128xf32>
    %55 = arith.select %34, %41, %54 : vector<1x2x128xi1>, vector<1x2x128xf32>
    %cst_32 = arith.constant 0.000000e+00 : f32
    %56 = vector.broadcast %cst_32 : f32 to vector<1x2x128xf32>
    %57 = arith.cmpf olt, %55, %56 : vector<1x2x128xf32>
    %cst_33 = arith.constant 3.600000e+02 : f32
    %58 = vector.broadcast %cst_33 : f32 to vector<1x2x128xf32>
    %59 = arith.addf %55, %58 : vector<1x2x128xf32>
    %60 = arith.select %57, %59, %55 : vector<1x2x128xi1>, vector<1x2x128xf32>
    %cst_34 = arith.constant 0.0174532924 : f32
    %61 = vector.broadcast %cst_34 : f32 to vector<1x2x128xf32>
    %62 = arith.mulf %60, %61 : vector<1x2x128xf32>
    %63 = math.cos %62 : vector<1x2x128xf32>
    %64 = arith.mulf %63, %31 : vector<1x2x128xf32>
    %65 = arith.mulf %64, %13 : vector<1x2x128xf32>
    %66 = arith.maximumf %7, %9 : vector<1x2x128xf32>
    %67 = arith.maximumf %66, %11 : vector<1x2x128xf32>
    %68 = arith.minimumf %7, %9 : vector<1x2x128xf32>
    %69 = arith.minimumf %68, %11 : vector<1x2x128xf32>
    %70 = arith.subf %67, %69 : vector<1x2x128xf32>
    %cst_35 = arith.constant 9.99999974E-5 : f32
    %71 = vector.broadcast %cst_35 : f32 to vector<1x2x128xf32>
    %72 = arith.addf %67, %71 : vector<1x2x128xf32>
    %73 = tpu.reciprocal %72 {approx = true} : vector<1x2x128xf32> -> vector<1x2x128xf32>
    %74 = arith.mulf %72, %73 : vector<1x2x128xf32>
    %cst_36 = arith.constant 2.000000e+00 : f32
    %75 = vector.broadcast %cst_36 : f32 to vector<1x2x128xf32>
    %76 = arith.subf %75, %74 : vector<1x2x128xf32>
    %77 = arith.mulf %73, %76 : vector<1x2x128xf32>
    %cst_37 = arith.constant 9.99999974E-5 : f32
    %78 = vector.broadcast %cst_37 : f32 to vector<1x2x128xf32>
    %79 = arith.addf %70, %78 : vector<1x2x128xf32>
    %80 = tpu.reciprocal %79 {approx = true} : vector<1x2x128xf32> -> vector<1x2x128xf32>
    %81 = arith.mulf %79, %80 : vector<1x2x128xf32>
    %cst_38 = arith.constant 2.000000e+00 : f32
    %82 = vector.broadcast %cst_38 : f32 to vector<1x2x128xf32>
    %83 = arith.subf %82, %81 : vector<1x2x128xf32>
    %84 = arith.mulf %80, %83 : vector<1x2x128xf32>
    %85 = arith.mulf %70, %77 : vector<1x2x128xf32>
    %86 = arith.cmpf oge, %7, %9 : vector<1x2x128xf32>
    %87 = arith.cmpf oge, %7, %11 : vector<1x2x128xf32>
    %88 = arith.andi %86, %87 : vector<1x2x128xi1>
    %cst_39 = arith.constant dense<true> : vector<1x2x128xi1>
    %89 = arith.xori %88, %cst_39 : vector<1x2x128xi1>
    %90 = arith.cmpf oge, %9, %11 : vector<1x2x128xf32>
    %91 = arith.andi %89, %90 : vector<1x2x128xi1>
    %92 = arith.subf %9, %11 : vector<1x2x128xf32>
    %cst_40 = arith.constant 6.000000e+01 : f32
    %93 = vector.broadcast %cst_40 : f32 to vector<1x2x128xf32>
    %94 = arith.mulf %93, %92 : vector<1x2x128xf32>
    %95 = arith.mulf %94, %84 : vector<1x2x128xf32>
    %96 = arith.subf %11, %7 : vector<1x2x128xf32>
    %cst_41 = arith.constant 6.000000e+01 : f32
    %97 = vector.broadcast %cst_41 : f32 to vector<1x2x128xf32>
    %98 = arith.mulf %97, %96 : vector<1x2x128xf32>
    %99 = arith.mulf %98, %84 : vector<1x2x128xf32>
    %cst_42 = arith.constant 1.200000e+02 : f32
    %100 = vector.broadcast %cst_42 : f32 to vector<1x2x128xf32>
    %101 = arith.addf %100, %99 : vector<1x2x128xf32>
    %102 = arith.subf %7, %9 : vector<1x2x128xf32>
    %cst_43 = arith.constant 6.000000e+01 : f32
    %103 = vector.broadcast %cst_43 : f32 to vector<1x2x128xf32>
    %104 = arith.mulf %103, %102 : vector<1x2x128xf32>
    %105 = arith.mulf %104, %84 : vector<1x2x128xf32>
    %cst_44 = arith.constant 2.400000e+02 : f32
    %106 = vector.broadcast %cst_44 : f32 to vector<1x2x128xf32>
    %107 = arith.addf %106, %105 : vector<1x2x128xf32>
    %108 = arith.select %91, %101, %107 : vector<1x2x128xi1>, vector<1x2x128xf32>
    %109 = arith.select %88, %95, %108 : vector<1x2x128xi1>, vector<1x2x128xf32>
    %cst_45 = arith.constant 0.000000e+00 : f32
    %110 = vector.broadcast %cst_45 : f32 to vector<1x2x128xf32>
    %111 = arith.cmpf olt, %109, %110 : vector<1x2x128xf32>
    %cst_46 = arith.constant 3.600000e+02 : f32
    %112 = vector.broadcast %cst_46 : f32 to vector<1x2x128xf32>
    %113 = arith.addf %109, %112 : vector<1x2x128xf32>
    %114 = arith.select %111, %113, %109 : vector<1x2x128xi1>, vector<1x2x128xf32>
    %cst_47 = arith.constant 0.0174532924 : f32
    %115 = vector.broadcast %cst_47 : f32 to vector<1x2x128xf32>
    %116 = arith.mulf %114, %115 : vector<1x2x128xf32>
    %117 = math.sin %116 : vector<1x2x128xf32>
    %118 = arith.mulf %117, %85 : vector<1x2x128xf32>
    %119 = arith.mulf %118, %67 : vector<1x2x128xf32>
    %120 = arith.subf %65, %119 : vector<1x2x128xf32>
    %121 = math.absf %120 : vector<1x2x128xf32>
    %122 = vector.shape_cast %121 : vector<1x2x128xf32> to vector<1x1x2x128xf32>
    %cst_48 = arith.constant dense<0.000000e+00> : vector<1xf32>
    %123 = vector.multi_reduction <add>, %122, %cst_48 [1, 2, 3] : vector<1x1x2x128xf32> to vector<1xf32>
    %124 = vector.shape_cast %123 : vector<1xf32> to vector<1x1x1x1xf32>
    %125 = vector.extract %124[0, 0, 0, 0] : f32 from vector<1x1x1x1xf32>
    %cst_49 = arith.constant 9.765625E-4 : f32
    %126 = arith.mulf %125, %cst_49 : f32
    %127 = vector.broadcast %126 : f32 to vector<8x128xf32>
    %128 = vector.shape_cast %127 : vector<8x128xf32> to vector<1x1x8x128xf32>
    %c0_50 = arith.constant 0 : index
    %c0_51 = arith.constant 0 : index
    %c0_52 = arith.constant 0 : index
    %c0_53 = arith.constant 0 : index
    %129 = vector.load %arg8[%c0_50, %c0_51, %c0_52, %c0_53] : memref<1x1x8x128xf32, #tpu.memory_space<vmem>>, vector<1x1x8x128xf32>
    tpu.vector_store %arg8[%c0_50, %c0_51, %c0_52, %c0_53], %128 {strides = array<i32>} : memref<1x1x8x128xf32, #tpu.memory_space<vmem>>, vector<1x1x8x128xf32>,
    return
  }
  func.func @transform_0(%arg0: i32, %arg1: i32) -> (i32, i32, i32, i32) {
    %c0_i32 = arith.constant 0 : i32
    %c0_i32_0 = arith.constant 0 : i32
    %c0_i32_1 = arith.constant 0 : i32
    return %arg0, %c0_i32, %arg1, %c0_i32_0 : i32, i32, i32, i32
  }
  func.func @transform_1(%arg0: i32, %arg1: i32) -> (i32, i32, i32, i32) {
    %c1_i32 = arith.constant 1 : i32
    %c0_i32 = arith.constant 0 : i32
    %c0_i32_0 = arith.constant 0 : i32
    return %arg0, %c1_i32, %arg1, %c0_i32 : i32, i32, i32, i32
  }
  func.func @transform_2(%arg0: i32, %arg1: i32) -> (i32, i32, i32, i32) {
    %c2_i32 = arith.constant 2 : i32
    %c0_i32 = arith.constant 0 : i32
    %c0_i32_0 = arith.constant 0 : i32
    return %arg0, %c2_i32, %arg1, %c0_i32 : i32, i32, i32, i32
  }
  func.func @transform_3(%arg0: i32, %arg1: i32) -> (i32, i32, i32, i32) {
    %c0_i32 = arith.constant 0 : i32
    %c0_i32_0 = arith.constant 0 : i32
    %c0_i32_1 = arith.constant 0 : i32
    return %arg0, %c0_i32, %arg1, %c0_i32_0 : i32, i32, i32, i32
  }
  func.func @transform_4(%arg0: i32, %arg1: i32) -> (i32, i32, i32, i32) {
    %c1_i32 = arith.constant 1 : i32
    %c0_i32 = arith.constant 0 : i32
    %c0_i32_0 = arith.constant 0 : i32
    return %arg0, %c1_i32, %arg1, %c0_i32 : i32, i32, i32, i32
  }
  func.func @transform_5(%arg0: i32, %arg1: i32) -> (i32, i32, i32, i32) {
    %c2_i32 = arith.constant 2 : i32
    %c0_i32 = arith.constant 0 : i32
    %c0_i32_0 = arith.constant 0 : i32
    return %arg0, %c2_i32, %arg1, %c0_i32 : i32, i32, i32, i32
  }
  func.func @transform_6(%arg0: i32, %arg1: i32) -> (i32, i32, i32, i32) {
    %c0_i32 = arith.constant 0 : i32
    %c0_i32_0 = arith.constant 0 : i32
    %c0_i32_1 = arith.constant 0 : i32
    return %arg0, %arg1, %c0_i32, %c0_i32_0 : i32, i32, i32, i32
  }
}

</mosaic_0001>

<bundles_post_ra>
// kernel: tpu_custom_call.1
= control target key start
LH: loop header
LB: loop body
LE: loop exit
PB: predicated region body
PF: predicated region fallthrough
CT: control target
= control target key end

     0   :  { %s1884_s0 = inlined_call_operand.hbm [shape: f32[2,3,2,128], index: 0, kind: input, shape index: {}]   ;;  %s1885_s1 = inlined_call_operand.hbm [shape: f32[2,3,2,128], index: 1, kind: input, shape index: {}]   ;;  %s1886_s2 = inlined_call_operand.hbm [shape: f32[2,3,2,128], index: 2, kind: input, shape index: {}]   ;;  %s1887_s3 = inlined_call_operand.hbm [shape: f32[2,3,2,128], index: 3, kind: input, shape index: {}]   ;;  %s1888_s4 = inlined_call_operand.vmem [shape: f32[2,3,2,128], index: 4, kind: input, shape index: {}]   ;;  %s1889_s5 = inlined_call_operand.hbm [shape: f32[2,3,2,128], index: 5, kind: input, shape index: {}]   ;;  %s1890_s6 = inlined_call_operand.hbm [shape: f32[2,1,8,128], index: 6, kind: output, shape index: {}]  }
   0x1   :  { %1903 = sst [smem:[#allocation22_spill]] %s1884_s0 }
   0x2   :  { %1904 = sst [smem:[#allocation23_spill]] %s1885_s1 }
   0x3   :  { %1905 = sst [smem:[#allocation24_spill]] %s1887_s3 }
   0x4   :  { %11 = vsyncpa [#allocation3], 0 }
   0x5   :  { %13 = vsyncpa [#allocation3 + $0x1], 0 }
   0x6   :  { %14 = vsyncpa [#allocation6], 0 }
   0x7   :  { %16 = vsyncpa [#allocation6 + $0x1], 0 }
   0x8   :  { %17 = vsyncpa [#allocation9], 0 }
   0x9   :  { %19 = vsyncpa [#allocation9 + $0x1], 0 }
   0xa   :  { %20 = vsyncpa [#allocation4], 0 }
   0xb   :  { %22 = vsyncpa [#allocation4 + $0x1], 0  ;;  %s1450_s21 = smov 0   ;;  %s1452_s22 = smov 0  }
   0xc   :  { %s1454_s23 = smov 0   ;;  %s1456_s24 = smov 0  }
   0xd   :  { %s1458_s25 = smov 0   ;;  %s1460_s26 = smov 0  }
   0xe LB: > { %1906 = sst [smem:[#allocation16_spill]] %s1380_s21  ;;  %s1481_s27 = sadd.s32 4294967295, %s1400_s26   ;;  %s1400_s26 = sphi %s1460_s26, %s28_s26   ;;  %s1396_s25 = sphi %s1458_s25, %s1947_s25   ;;  %s1392_s24 = sphi %s1456_s24, %s1946_s24   ;;  %s1388_s23 = sphi %s1454_s23, %s1950_s23   ;;  %s1384_s22 = sphi %s1452_s22, %s1949_s22   ;;  %s1380_s21 = sphi %s1450_s21, %s1948_s21  }
   0xf   : > { %1907 = sst [smem:[#allocation17_spill]] %s1396_s25  ;;  %s1006_s28 = sadd.s32 4294967294, %s1400_s26  }
  0x10   : > { %1908 = sst [smem:[#allocation18_spill]] %s1400_s26  ;;  %s40_s29 = sadd.s32 1, %s1396_s25 }
  0x11   : > { %s49_s30 = sadd.s32 1, %s1388_s23  ;;  %p42_p0 = scmp.ge.s32.totalorder %s40_s29, 2 }
  0x12   : > { %p56_p1 = scmp.ne.s32.totalorder %s1388_s23, %s1384_s22  ;;  %p57_p2 = scmp.eq.s32.totalorder %s1400_s26, 0 }
  0x13   : > { %p62_p3 = scmp.ne.s32.totalorder %s1384_s22, %s1380_s21  ;;  %s1952_s29 = smov (%p42_p0, %s40_s29), 0 }
  0x14   : > { %1909 = sst [smem:[#allocation19_spill]] %s1952_s29  ;;  %p1493_p4 = por %p57_p2, %p56_p1 }
  0x15   : > { %p63_p5 = scmp.eq.s32.totalorder %s1481_s27, 0  ;;  %s44_s8 = ssub.s32 %s1396_s25, %s1952_s29 }
  0x16   : > { %p228_p6 = scmp.eq.s32.totalorder %s1481_s27, 1  ;;  %p47_p7 = scmp.eq.s32.totalorder %s44_s8, 0 }
  0x17   : > { %p1501_p8 = por %p63_p5, %p62_p3  ;;  %p234_p10 = scmp.eq.s32.totalorder %s1006_s28, 1 }
  0x18   : > { %p1505_p9 = por %p228_p6, %p56_p1  ;;  %p1084_p13 = scmp.lt.s32.totalorder %s1400_s26, 2 }
  0x19   : > { %s1911_s9 = scalar_select %p1501_p8, 1, 0 }
  0x1a   : > { %s1912_s10 = scalar_select %p1505_p9, 1, 0 }
  0x1b   : > { %s1510_s11 = scalar_select %p47_p7, %s1388_s23, %s49_s30  }
  0x1c   : > { %p1512_p11 = por %p234_p10, %p62_p3  ;;  %s1891_s13 = sand.u32 1, %s1388_s23  }
  0x1d   : > { %1913 = sst [smem:[#allocation20_spill]] %s1510_s11  ;;  %s1521_s14 = sshll.u32 %s1891_s13, 1 }
  0x1e   : > { %s1914_s12 = scalar_select %p1512_p11, 1, 0 }
  0x1f   : > { %s1524_s15 = smul.u32 96, %s1396_s25  ;;  %p1528_p0 = pnand %p1084_p13, %p1493_p4 }
  0x20   : > { %1915 = sst [smem:[#allocation21_spill]] %s1914_s12  ;;  %s274_s17 = sand.u32 1, %s1400_s26  }
  0x21   : > { %s1916_s16 = scalar_select %p1528_p0, 1, 0 }
  0x22   : > { %s1917_s1 = sld [smem:[#allocation23_spill]]  ;;  %s278_s30 = scalar_lea.vmem [#allocation5], %s1521_s14 }
  0x23   : > { %s288_s8 = sshll.u32 %s278_s30, 4  ;;  %s1545_s7 = scalar_lea.sflag [#allocation6], %s274_s17  ;;  %s1540_s8 = int_to_ptr.vmem [resolvable:$true] %s288_s8 }
  0x24   : > { %p1550_p3 = pneg %p1528_p0 }
  0x28   : > { %s849_s20 = scalar_lea.hbm %s1917_s1, %s1524_s15  ;;  %s1162_s30 = scalar_lea.hbm %s1917_s1, 192 }
  0x29   : > { %s1537_s28 = scalar_lea.hbm %s849_s20, 32  ;;  %s1187_s13 = scalar_lea.hbm %s849_s20, 64 }
  0x2a   : > { %p1158_p2 = scmp.ne.s32.totalorder %s1537_s28, %s1187_s13  ;;  %p1163_p6 = scmp.lt.u32.totalorder %s1537_s28, %s1917_s1 }
  0x2b   : > { %p1164_p7 = scmp.lt.u32.totalorder %s1162_s30, %s1187_s13  ;;  %p1166_p13 = scmp.lt.u32.totalorder %s1187_s13, %s1537_s28 }
  0x2c   : > { %p1160_p4 = pnand %p1550_p3, %p1158_p2 }
  0x2d   : > { %p1165_p10 = por %p1164_p7, %p1163_p6 }
  0x2e   : > { %p1161_p5 = pneg %p1160_p4 }
  0x2f   : > { %p1167_p12 = por %p1166_p13, %p1165_p10 }
  0x31   : > { %p1168_p1 = pnand %p1167_p12, %p1161_p5 }
  0x33   : > { %1171 = shalt.err (!%p1168_p1)
}
  0x34   : > { %s1172_s20 = scalar_lea.vmem %s1540_s8, 32  ;;  %s1402_s18 = smov [#allocation5]  }
  0x35   : > { %p1173_p2 = scmp.ne.s32.totalorder %s1540_s8, %s1172_s20  ;;  %s1177_s19 = sshll.u32 %s1402_s18, 4  ;;  %s1178_s19 = int_to_ptr.vmem [resolvable:$false] %s1177_s19 }
  0x36   : > { %s1179_s25 = scalar_lea.vmem %s1178_s19, 64  ;;  %p1180_p9 = scmp.lt.s32.totalorder %s1540_s8, %s1178_s19 }
  0x37   : > { %p1175_p4 = pnand %p1173_p2, %p1550_p3  ;;  %p1181_p8 = scmp.lt.s32.totalorder %s1179_s25, %s1172_s20 }
  0x39   : > { %p1176_p11 = pneg %p1175_p4  ;;  %p1182_p6 = por %p1181_p8, %p1180_p9 }
  0x3b   : > { %p1183_p7 = pnand %p1182_p6, %p1176_p11 }
  0x3d   : > { %1186 = shalt.err (!%p1183_p7)
}
  0x3e   : > { %1070 = dma.hbm_to_vmem [thread:$0]  (!%p1528_p0), %s1537_s28, 32, %s1540_s8, %s1545_s7  }
  0x3f   : > { %p367_p12 = scmp.lt.s32.totalorder %s1400_s26, 3  ;;  %s1919_s3 = sld [smem:[#allocation24_spill]] }
  0x40   : > { %p1920_p8 = scmp.ge.s32.totalorder %s1400_s26, 1  ;;  %s320_s18 = scalar_lea.vmem [#allocation8], %s1521_s14 }
  0x41   : > { %s329_s19 = sshll.u32 %s320_s18, 4  ;;  %s1590_s28 = scalar_lea.sflag [#allocation9], %s274_s17  ;;  %s330_s19 = int_to_ptr.vmem [resolvable:$true] %s329_s19 }
  0x42   : > { %p1583_p9 = pnand %p1920_p8, %p367_p12 }
  0x44   : > { %s1921_s20 = scalar_select %p1583_p9, 1, 0 }
  0x45   : > { %s1579_s30 = scalar_lea.hbm %s1919_s3, %s1524_s15  ;;  %s1193_s13 = scalar_lea.hbm %s1919_s3, 192 }
  0x46   : > { %s1188_s8 = scalar_lea.hbm %s1579_s30, 32  ;;  %p1194_p10 = scmp.lt.u32.totalorder %s1579_s30, %s1919_s3 }
  0x47   : > { %p1189_p11 = scmp.ne.s32.totalorder %s1579_s30, %s1188_s8  ;;  %p1195_p13 = scmp.lt.u32.totalorder %s1193_s13, %s1188_s8 }
  0x48   : > { %p1197_p4 = scmp.lt.u32.totalorder %s1188_s8, %s1579_s30 }
  0x49   : > { %p1191_p1 = pnand %p1189_p11, %p1550_p3  ;;  %p1196_p2 = por %p1195_p13, %p1194_p10 }
  0x4b   : > { %p1192_p5 = pneg %p1191_p1  ;;  %p1198_p6 = por %p1197_p4, %p1196_p2 }
  0x4d   : > { %p1199_p7 = pnand %p1198_p6, %p1192_p5 }
  0x4f   : > { %1202 = shalt.err (!%p1199_p7)
}
  0x50   : > { %s1203_s17 = scalar_lea.vmem %s330_s19, 32  ;;  %s1403_s18 = smov [#allocation8]  }
  0x51   : > { %p1204_p12 = scmp.ne.s32.totalorder %s330_s19, %s1203_s17  ;;  %s1208_s26 = sshll.u32 %s1403_s18, 4  ;;  %s1209_s26 = int_to_ptr.vmem [resolvable:$false] %s1208_s26 }
  0x52   : > { %s1210_s25 = scalar_lea.vmem %s1209_s26, 64  ;;  %p1211_p1 = scmp.lt.s32.totalorder %s330_s19, %s1209_s26 }
  0x53   : > { %p1206_p8 = pnand %p1204_p12, %p1550_p3  ;;  %p1212_p9 = scmp.lt.s32.totalorder %s1210_s25, %s1203_s17 }
  0x55   : > { %p1207_p11 = pneg %p1206_p8  ;;  %p1213_p0 = por %p1212_p9, %p1211_p1 }
  0x57   : > { %p1214_p10 = pnand %p1213_p0, %p1207_p11 }
  0x59   : > { %1217 = shalt.err (!%p1214_p10)
}
  0x5a   : > { %p1922_p13 = scmp.ne.s32.totalorder %s1916_s16, 0  ;;  %s1923_s0 = sld [smem:[#allocation22_spill]] }
  0x5b   : > { %s258_s26 = scalar_lea.vmem [#allocation2], %s1521_s14  ;;  %s1623_s18 = scalar_lea.hbm %s1886_s2, %s1524_s15 }
  0x5c   : > { %1076 = dma.hbm_to_vmem [thread:$0]  (!%p1922_p13), %s1579_s30, 32, %s330_s19, %s1590_s28  }
  0x5d   : > { %s267_s11 = sshll.u32 %s258_s26, 4  ;;  %s1924_s25 = sand.u32 1, %s1388_s23   ;;  %s1617_s11 = int_to_ptr.vmem [resolvable:$true] %s267_s11 }
  0x5e   : > { %s255_s30 = scalar_lea.sflag [#allocation3], %s1924_s25 }
  0x60   : > { %s1614_s8 = scalar_lea.hbm %s1923_s0, %s1524_s15  ;;  %s1223_s3 = scalar_lea.hbm %s1923_s0, 192 }
  0x61   : > { %s1218_s19 = scalar_lea.hbm %s1614_s8, 32  ;;  %p1224_p2 = scmp.lt.u32.totalorder %s1614_s8, %s1923_s0 }
  0x62   : > { %p1219_p0 = scmp.ne.s32.totalorder %s1614_s8, %s1218_s19  ;;  %p1225_p4 = scmp.lt.u32.totalorder %s1223_s3, %s1218_s19 }
  0x63   : > { %p1227_p7 = scmp.lt.u32.totalorder %s1218_s19, %s1614_s8 }
  0x64   : > { %p1221_p9 = pnand %p1219_p0, %p1550_p3  ;;  %p1226_p6 = por %p1225_p4, %p1224_p2 }
  0x66   : > { %p1222_p5 = pneg %p1221_p9  ;;  %p1228_p12 = por %p1227_p7, %p1226_p6 }
  0x68   : > { %p1229_p8 = pnand %p1228_p12, %p1222_p5 }
  0x6a   : > { %1232 = shalt.err (!%p1229_p8)
}
  0x6b   : > { %s1233_s13 = scalar_lea.vmem %s1617_s11, 32  ;;  %s1404_s17 = smov [#allocation2]  }
  0x6c   : > { %p1234_p11 = scmp.ne.s32.totalorder %s1617_s11, %s1233_s13  ;;  %s1238_s25 = sshll.u32 %s1404_s17, 4  ;;  %s1239_s25 = int_to_ptr.vmem [resolvable:$false] %s1238_s25 }
  0x6d   : > { %s1240_s21 = scalar_lea.vmem %s1239_s25, 64  ;;  %p1241_p0 = scmp.lt.s32.totalorder %s1617_s11, %s1239_s25 }
  0x6e   : > { %p1236_p1 = pnand %p1234_p11, %p1550_p3  ;;  %p1242_p9 = scmp.lt.s32.totalorder %s1240_s21, %s1233_s13 }
  0x70   : > { %p1237_p10 = pneg %p1236_p1  ;;  %p1243_p2 = por %p1242_p9, %p1241_p0 }
  0x72   : > { %p1244_p4 = pnand %p1243_p2, %p1237_p10 }
  0x74   : > { %1247 = shalt.err (!%p1244_p4)
}
  0x75   : > { %1067 = dma.hbm_to_vmem [thread:$0]  (!%p1922_p13), %s1614_s8, 32, %s1617_s11, %s255_s30  }
  0x76   : > { %s1649_s3 = scalar_lea.hbm %s1623_s18, 64  ;;  %s299_s19 = scalar_lea.vmem [#allocation7], %s1521_s14 }
  0x77   : > { %s309_s1 = sshll.u32 %s299_s19, 4  ;;  %s1278_s12 = scalar_lea.hbm %s1623_s18, 96  ;;  %s310_s1 = int_to_ptr.vmem [resolvable:$true] %s309_s1 }
  0x78   : > { %p1249_p5 = scmp.ne.s32.totalorder %s1649_s3, %s1278_s12  ;;  %s1253_s17 = scalar_lea.hbm %s1886_s2, 192 }
  0x79   : > { %p1254_p12 = scmp.lt.u32.totalorder %s1649_s3, %s1886_s2  ;;  %p1255_p8 = scmp.lt.u32.totalorder %s1253_s17, %s1278_s12 }
  0x7a   : > { %p1251_p6 = pnand %p1249_p5, %p1550_p3  ;;  %p1257_p1 = scmp.lt.u32.totalorder %s1278_s12, %s1649_s3 }
  0x7b   : > { %p1256_p11 = por %p1255_p8, %p1254_p12 }
  0x7c   : > { %p1252_p7 = pneg %p1251_p6 }
  0x7d   : > { %p1258_p10 = por %p1257_p1, %p1256_p11 }
  0x7f   : > { %p1259_p0 = pnand %p1258_p10, %p1252_p7 }
  0x81   : > { %1262 = shalt.err (!%p1259_p0)
}
  0x82   : > { %s1263_s8 = scalar_lea.vmem %s310_s1, 32  ;;  %s1405_s11 = smov [#allocation7]  }
  0x83   : > { %p1264_p9 = scmp.ne.s32.totalorder %s310_s1, %s1263_s8  ;;  %s1268_s18 = sshll.u32 %s1405_s11, 4  ;;  %s1269_s18 = int_to_ptr.vmem [resolvable:$false] %s1268_s18 }
  0x84   : > { %s1270_s30 = scalar_lea.vmem %s1269_s18, 64  ;;  %p1271_p5 = scmp.lt.s32.totalorder %s310_s1, %s1269_s18 }
  0x85   : > { %p1266_p2 = pnand %p1264_p9, %p1550_p3  ;;  %p1272_p6 = scmp.lt.s32.totalorder %s1270_s30, %s1263_s8 }
  0x87   : > { %p1267_p4 = pneg %p1266_p2  ;;  %p1273_p13 = por %p1272_p6, %p1271_p5 }
  0x89   : > { %p1274_p8 = pnand %p1273_p13, %p1267_p4 }
  0x8b   : > { %1277 = shalt.err (!%p1274_p8)
}
  0x8c   : > { %p1925_p12 = scmp.ne.s32.totalorder %s1916_s16, 0  ;;  %s877_s26 = scalar_lea.hbm %s1889_s5, %s1524_s15 }
  0x8d   : > { %s352_s13 = scalar_lea.vmem [#allocation10], %s1521_s14  ;;  %s878_s25 = scalar_lea.hbm %s877_s26, 64 }
  0x8e   : > { %1073 = dma.hbm_to_vmem [thread:$0]  (!%p1925_p12), %s1649_s3, 32, %s310_s1, %s1545_s7  }
  0x8f   : > { %s362_s17 = sshll.u32 %s352_s13, 4  ;;  %s1309_s21 = scalar_lea.hbm %s877_s26, 96  ;;  %s363_s17 = int_to_ptr.vmem [resolvable:$true] %s362_s17 }
  0x90   : > { %p1280_p7 = scmp.ne.s32.totalorder %s878_s25, %s1309_s21  ;;  %s1284_s18 = scalar_lea.hbm %s1889_s5, 192 }
  0x91   : > { %p1285_p1 = scmp.lt.u32.totalorder %s878_s25, %s1889_s5  ;;  %p1286_p10 = scmp.lt.u32.totalorder %s1284_s18, %s1309_s21 }
  0x92   : > { %p1282_p13 = pnand %p1280_p7, %p1550_p3  ;;  %p1288_p9 = scmp.lt.u32.totalorder %s1309_s21, %s878_s25 }
  0x93   : > { %p1287_p0 = por %p1286_p10, %p1285_p1 }
  0x94   : > { %p1283_p11 = pneg %p1282_p13 }
  0x95   : > { %p1289_p2 = por %p1288_p9, %p1287_p0 }
  0x97   : > { %p1290_p4 = pnand %p1289_p2, %p1283_p11 }
  0x99   : > { %1293 = shalt.err (!%p1290_p4)
}
  0x9a   : > { %s1294_s14 = scalar_lea.vmem %s363_s17, 32  ;;  %s1406_s15 = smov [#allocation10]  }
  0x9b   : > { %p1295_p5 = scmp.ne.s32.totalorder %s363_s17, %s1294_s14  ;;  %s1299_s7 = sshll.u32 %s1406_s15, 4  ;;  %s1300_s7 = int_to_ptr.vmem [resolvable:$false] %s1299_s7 }
  0x9c   : > { %s1301_s3 = scalar_lea.vmem %s1300_s7, 64  ;;  %p1302_p7 = scmp.lt.s32.totalorder %s363_s17, %s1300_s7 }
  0x9d   : > { %p1297_p6 = pnand %p1295_p5, %p1550_p3  ;;  %p1303_p13 = scmp.lt.s32.totalorder %s1301_s3, %s1294_s14 }
  0x9f   : > { %p1298_p8 = pneg %p1297_p6  ;;  %p1304_p12 = por %p1303_p13, %p1302_p7 }
  0xa1   : > { %p1305_p1 = pnand %p1304_p12, %p1298_p8 }
  0xa3   : > { %1308 = shalt.err (!%p1305_p1)
}
  0xa4   : > { %p1926_p10 = scmp.ne.s32.totalorder %s1916_s16, 0  ;;  %p1927_p11 = scmp.ne.s32.totalorder %s1921_s20, 0 }
  0xa5   : > { %s1691_s0 = sand.u32 (!%p1927_p11), 1, %s1384_s22   ;;  %p1928_p3 = scmp.ne.s32.totalorder (!%p1927_p11), %s1911_s9, 0 }
  0xa6   : > { %1079 = dma.hbm_to_vmem [thread:$0]  (!%p1926_p10), %s878_s25, 32, %s363_s17, %s1590_s28  }
  0xa7   : > { %371 = sbr.rel (%p1927_p11) target bundleno = 539 (0x21b), region = 44  ;;  %s1020_s29 = sshll.u32 (!%p1927_p11), %s1691_s0, 1 }
  0xa8   : > { %s374_s1 = scalar_lea.sflag (!%p1927_p11), [#allocation3], %s1691_s0  ;;  %s377_s19 = scalar_lea.vmem (!%p1927_p11), [#allocation2], %s1020_s29 }
  0xae   : > { %1363 = dma.done.wait (%p1928_p3), %s374_s1, 32  }
  0xaf   : > { %1365 = vsyncadd (%p1928_p3), %s374_s1, 4294967264  ;;  %s382_s16 = sand.u32 1, %s1481_s27   ;;  %s386_s20 = scalar_lea.vmem [#allocation5], %s1020_s29 }
  0xb0   : > { %s383_s28 = scalar_lea.sflag [#allocation6], %s382_s16 }
  0xb1   : > { %1367 = dma.done.wait (%p1928_p3), %s383_s28, 64  }
  0xb2   : > { %1369 = vsyncadd (%p1928_p3), %s383_s28, 4294967232  ;;  %s395_s12 = scalar_lea.vmem [#allocation7], %s1020_s29  ;;  %s401_s26 = scalar_lea.sflag [#allocation9], %s382_s16 }
  0xb3   : > { %s404_s13 = scalar_lea.vmem [#allocation8], %s1020_s29 }
  0xb4   : > { %1371 = dma.done.wait (%p1928_p3), %s401_s26, 64  }
  0xb5   : > { %1373 = vsyncadd (%p1928_p3), %s401_s26, 4294967232  ;;  %p471_p12 = scmp.lt.s32.totalorder %s1392_s24, 1  ;;  %v480_v0 = vld [vmem:[%s377_s19] sm:$0x3]  ;;  %v481_v1 = vld [vmem:[%s386_s20] sm:$0x3] }
  0xb6   : > { %v482_v2 = vld [vmem:[%s395_s12] sm:$0x3]  ;;  %v483_v3 = vld [vmem:[%s404_s13] sm:$0x3]  ;;  %v486_v5 = vmax.f32 %v480_v0, %v481_v1  ;;  %v488_v6 = vmin.f32 %v480_v0, %v481_v1  ;;  %s413_s11 = scalar_lea.vmem [#allocation10], %s1020_s29  ;;  %vm502_vm0 = vcmp.ge.f32.partialorder %v480_v0, %v481_v1  ;;  %v515_v19 = vsub.f32 %v480_v0, %v481_v1  ;;  %s1025_s9 = sshll.u32 %s1691_s0, 3 }
  0xb7   : > { %s472_s27 = scalar_select %p471_p12, %s1392_s24, 1  ;;  %v485_v7 = vld [vmem:[%s413_s11] sm:$0x3]  ;;  %vm503_vm1 = vcmp.ge.f32.partialorder %v480_v0, %v482_v2  ;;  %v511_v18 = vsub.f32 %v482_v2, %v480_v0  ;;  %v508_v21 = vsub.f32 %v481_v1, %v482_v2  ;;  %vm1407_vm5 = vmmov 1  }
  0xb8   : > { %v1713_v8 = vmax.f32 %v486_v5, %v482_v2  ;;  %v489_v9 = vmin.f32 %v488_v6, %v482_v2  ;;  %vm1725_vm2 = vmand %vm502_vm0, %vm503_vm1  ;;  %v655_v24 = vsub.f32 %v485_v7, %v483_v3  ;;  %vm647_vm4 = vcmp.ge.f32.partialorder %v483_v3, %v485_v7  ;;  %s470_s18 = scalar_lea.vmem [#allocation11], %s1025_s9  ;;  %s1037_s14 = sshll.u32 %s1392_s24, 7 }
  0xb9   : > { %s1026_s17 = smul.u32 6, %s472_s27  ;;  %v512_v26 = vmul.f32 60.0, %v511_v18  ;;  %v516_v29 = vmul.f32 60.0, %v515_v19  ;;  %vm505_vm6 = vmxor %vm1725_vm2, %vm1407_vm5  ;;  %vm506_vm7 = vcmp.ge.f32.partialorder %v481_v1, %v482_v2  ;;  %v509_v32 = vmul.f32 60.0, %v508_v21  ;;  %s806_s30 = sshll.u32 %s470_s18, 4  ;;  %s1837_s30 = int_to_ptr.vmem [resolvable:$true] %s806_s30 }
  0xba   : > { %v1716_v12 = vsub.f32 %v1713_v8, %v489_v9  ;;  %v656_v36 = vmul.f32 60.0, %v655_v24  ;;  %vm1736_vm9 = vmand %vm505_vm6, %vm506_vm7  ;;  %v1408_v19 = vmov 683565275   ;;  %v1409_v21 = vmov 2475754826   ;;  %s1835_s1 = scalar_lea.hbm %s1890_s6, %s1037_s14  ;;  %s792_s19 = scalar_lea.sflag [#allocation4], %s1691_s0 }
  0xbb   : > { %s920_s8 = scalar_lea.vmem %s1888_s4, %s1026_s17  ;;  %v1410_v23 = vmov 2131351028   ;;  %v1413_v35 = vmov 1326507024   ;;  %s1310_s16 = scalar_lea.vmem %s1837_s30, 128 }
  0xbc   : > { %v1027_v4 = vld [vmem:[%s920_s8 + $0x2] sm:$0x3]  ;;  %v496_v15 = vadd.f32 0.0001, %v1716_v12  ;;  %p1311_p0 = scmp.ne.s32.totalorder %s1837_s30, %s1310_s16  ;;  %p1939_p9 = scmp.ne.s32.totalorder %s1912_s10, 0 }
  0xbd   : > { %v630_v10 = vmax.f32 %v483_v3, %v1027_v4  ;;  %v632_v11 = vmin.f32 %v483_v3, %v1027_v4  ;;  %vm646_vm3 = vcmp.ge.f32.partialorder %v483_v3, %v1027_v4  ;;  %v659_v27 = vsub.f32 %v483_v3, %v1027_v4  ;;  %s1414_s24 = smov [#allocation11]  }
  0xbe   : > { %1141 = vrcp.f32 %v496_v15  ;;  %v652_v31 = vsub.f32 %v1027_v4, %v485_v7  ;;  %vm1732_vm8 = vmand %vm646_vm3, %vm647_vm4  ;;  %vm650_vm11 = vcmp.ge.f32.partialorder %v1027_v4, %v485_v7  ;;  %p1312_p2 = pnand %p1311_p0, %p1939_p9  ;;  %s1314_s28 = sshll.u32 %s1414_s24, 4  ;;  %s1315_s28 = int_to_ptr.vmem [resolvable:$false] %s1314_s28 }
  0xbf   : > { %v1718_v13 = vmax.f32 %v630_v10, %v485_v7  ;;  %v633_v14 = vmin.f32 %v632_v11, %v485_v7  ;;  %v660_v37 = vmul.f32 60.0, %v659_v27  ;;  %vm649_vm10 = vmxor %vm1732_vm8, %vm1407_vm5  ;;  %v1412_v27 = vmov 920167782   ;;  %s1316_s20 = scalar_lea.vmem %s1315_s28, 256  ;;  %p1317_p5 = scmp.lt.s32.totalorder %s1837_s30, %s1315_s28 }
  0xc0   : > { %v653_v42 = vmul.f32 60.0, %v652_v31  ;;  %vm651_vm12 = vmand %vm649_vm10, %vm650_vm11  ;;  %p1313_p4 = pneg %p1312_p2  ;;  %p1318_p6 = scmp.lt.s32.totalorder %s1316_s20, %s1310_s16 }
  0xc1   : > { %v1722_v16 = vsub.f32 %v1718_v13, %v633_v14 }
  0xc2   : > { %p1319_p8 = por %p1318_p6, %p1317_p5 }
  0xc3   : > { %v640_v17 = vadd.f32 0.0001, %v1722_v16 }
  0xc4   : > { %p1320_p7 = pnand %p1319_p8, %p1313_p4 }
  0xc5   : > { %1143 = vrcp.f32 %v640_v17 }
  0xc8   : > { %v1142_v20 = vpop.eup %1141 }
  0xc9   : > { %v498_v22 = vmul.f32 %v1142_v20, %v496_v15 }
  0xcb   : > { %v499_v28 = vsub.f32 2.0, %v498_v22 }
  0xcd   : > { %v500_v33 = vmul.f32 %v1142_v20, %v499_v28 }
  0xcf   : > { %v1144_v25 = vpop.eup %1143  ;;  %v513_v39 = vmul.f32 %v512_v26, %v500_v33  ;;  %v517_v40 = vmul.f32 %v516_v29, %v500_v33  ;;  %v510_v43 = vmul.f32 %v509_v32, %v500_v33 }
  0xd0   : > { %v642_v30 = vmul.f32 %v1144_v25, %v640_v17 }
  0xd1   : > { %v514_v44 = vadd.f32 120.0, %v513_v39  ;;  %v518_v45 = vadd.f32 240.0, %v517_v40 }
  0xd2   : > { %v643_v34 = vsub.f32 2.0, %v642_v30 }
  0xd3   : > { %v519_v48 = vsel %vm1736_vm9, %v514_v44, %v518_v45 }
  0xd4   : > { %v644_v41 = vmul.f32 %v1144_v25, %v643_v34  ;;  %v520_v51 = vsel %vm1725_vm2, %v510_v43, %v519_v48  ;;  %v1411_v25 = vmov 2102212464  }
  0xd5   : > { %vm521_vm13 = vcmp.lt.f32.partialorder %v520_v51, 0.0  ;;  %v522_v53 = vadd.f32 360.0, %v520_v51 }
  0xd6   : > { %v657_v46 = vmul.f32 %v656_v36, %v644_v41  ;;  %v661_v47 = vmul.f32 %v660_v37, %v644_v41  ;;  %v654_v49 = vmul.f32 %v653_v42, %v644_v41 }
  0xd7   : > { %v523_v55 = vsel %vm521_vm13, %v522_v53, %v520_v51 }
  0xd8   : > { %v658_v50 = vadd.f32 120.0, %v657_v46  ;;  %v662_v52 = vadd.f32 240.0, %v661_v47  ;;  %v1749_v57 = vmul.f32 0.017453292, %v523_v55 }
  0xda   : > { %v663_v54 = vsel %vm651_vm12, %v658_v50, %v662_v52  ;;  %v525_v59 = vand.u32 2147483647, %v1749_v57  ;;  %v528_v60 = vand.u32 2139095040, %v1749_v57  ;;  %vm527_vm13 = vcmp.lt.s32.totalorder %v1749_v57, 0 }
  0xdb   : > { %v664_v56 = vsel %vm1732_vm8, %v654_v49, %v663_v54 }
  0xdc   : > { %vm665_vm14 = vcmp.lt.f32.partialorder %v664_v56, 0.0  ;;  %v666_v58 = vadd.f32 360.0, %v664_v56  ;;  %v529_v62 = vshrl.u32 %v528_v60, 23  ;;  %v532_v63 = vand.u32 8388607, %v525_v59 }
  0xde   : > { %v667_v61 = vsel %vm665_vm14, %v666_v58, %v664_v56  ;;  %v1028_v1 = vadd.s32 4294967169, %v529_v62  ;;  %v533_v5 = vor.u32 8388608, %v532_v63  ;;  %vm1803_vm14 = vcmp.le.f32.partialorder %v525_v59, 0.7853982 }
  0xdf   : > { %v1755_v0 = vmul.f32 0.017453292, %v667_v61 }
  0xe0   : > { %v535_v4 = vadd.s32 1, %v1028_v1  ;;  %v1761_v15 = vshll.u32 %v533_v5, 8 }
  0xe1   : > { %v669_v2 = vand.u32 2147483647, %v1755_v0  ;;  %v672_v3 = vand.u32 2139095040, %v1755_v0 }
  0xe2   : > { %vm536_vm15 = vcmp.gt.s32.totalorder %v535_v4, 0 }
  0xe3   : > { %v673_v6 = vshrl.u32 %v672_v3, 23  ;;  %v537_v7 = vsel %vm536_vm15, %v535_v4, 0  ;;  %v676_v10 = vand.u32 8388607, %v669_v2  ;;  %vm671_vm15 = vcmp.lt.s32.totalorder %v1755_v0, 0 }
  0xe4   : > { %v538_v11 = vshrl.u32 %v537_v7, 5  ;;  %v539_v14 = vand.u32 31, %v537_v7 }
  0xe5   : > { %v1032_v9 = vadd.s32 4294967169, %v673_v6  ;;  %v677_v29 = vor.u32 8388608, %v676_v10 }
  0xe6   : > { %v540_v18 = vsub.s32 32, %v539_v14  ;;  %v542_v20 = vshll.u32 %v1408_v19, %v539_v14  ;;  %v545_v22 = vshll.u32 %v1409_v21, %v539_v14  ;;  %v548_v24 = vshll.u32 %v1410_v23, %v539_v14 }
  0xe7   : > { %v679_v17 = vadd.s32 1, %v1032_v9  ;;  %v551_v26 = vshll.u32 %v1411_v25, %v539_v14  ;;  %v554_v28 = vshll.u32 %v1412_v27, %v539_v14  ;;  %vm557_vm0 = vcmp.lt.s32.totalorder %v538_v11, 1 }
  0xe8   : > { %v541_v30 = vshrl.u32 %v1408_v19, %v540_v18  ;;  %v543_v31 = vshrl.u32 %v1409_v21, %v540_v18  ;;  %v546_v32 = vshrl.u32 %v1410_v23, %v540_v18  ;;  %v549_v33 = vshrl.u32 %v1411_v25, %v540_v18 }
  0xe9   : > { %v552_v34 = vshrl.u32 %v1412_v27, %v540_v18  ;;  %v555_v36 = vshrl.u32 %v1413_v35, %v540_v18  ;;  %vm558_vm1 = vcmp.lt.s32.totalorder %v538_v11, 2  ;;  %vm560_vm2 = vcmp.lt.s32.totalorder %v538_v11, 4 }
  0xea   : > { %v544_v37 = vor.u32 %v543_v31, %v542_v20  ;;  %v547_v38 = vor.u32 %v546_v32, %v545_v22  ;;  %v550_v39 = vor.u32 %v549_v33, %v548_v24  ;;  %vm680_vm3 = vcmp.gt.s32.totalorder %v679_v17, 0 }
  0xeb   : > { %v553_v40 = vor.u32 %v552_v34, %v551_v26  ;;  %v556_v41 = vor.u32 %v555_v36, %v554_v28  ;;  %vm559_vm4 = vcmp.lt.s32.totalorder %v538_v11, 3  ;;  %v681_v42 = vsel %vm680_vm3, %v679_v17, 0 }
  0xec   : > { %v561_v43 = vsel %vm557_vm0, %v541_v30, %v544_v37  ;;  %v562_v44 = vsel %vm560_vm2, %v550_v39, 2102212464  ;;  %v565_v45 = vsel %vm557_vm0, %v544_v37, %v547_v38  ;;  %v569_v46 = vsel %vm557_vm0, %v547_v38, %v550_v39 }
  0xed   : > { %v563_v47 = vsel %vm559_vm4, %v547_v38, %v562_v44  ;;  %v566_v48 = vsel %vm560_vm2, %v553_v40, 920167782  ;;  %v570_v49 = vsel %vm560_vm2, %v556_v41, 1326507024  ;;  %v682_v52 = vshrl.u32 %v681_v42, 5 }
  0xee   : > { %v567_v50 = vsel %vm559_vm4, %v550_v39, %v566_v48  ;;  %v571_v51 = vsel %vm559_vm4, %v553_v40, %v570_v49  ;;  %v683_v53 = vand.u32 31, %v681_v42  ;;  %v564_v54 = vsel %vm558_vm1, %v561_v43, %v563_v47 }
  0xef   : > { %v568_v55 = vsel %vm558_vm1, %v565_v45, %v567_v50  ;;  %v572_v56 = vsel %vm558_vm1, %v569_v46, %v571_v51  ;;  %v717_v58 = vshll.u32 %v677_v29, 8  ;;  %v580_v6 = vmul.u32 %v1761_v15, %v564_v54 }
  0xf0   : > { %v1770_v60 = vmul.u32.u64.low %v1761_v15, %v572_v56  ;;  %v1771_v61 = vmul.u32.u64.high %v1761_v15, %v572_v56, %v1770_v60  ;;  %v1774_v62 = vmul.u32.u64.low %v1761_v15, %v568_v55  ;;  %v1775_v63 = vmul.u32.u64.high %v1761_v15, %v568_v55, %v1774_v62 }
  0xf1   : > { %v684_v1 = vsub.s32 32, %v683_v53  ;;  %v686_v3 = vshll.u32 %v1408_v19, %v683_v53  ;;  %v689_v4 = vshll.u32 %v1409_v21, %v683_v53  ;;  %v692_v5 = vshll.u32 %v1410_v23, %v683_v53 }
  0xf2   : > { %v695_v7 = vshll.u32 %v1411_v25, %v683_v53  ;;  %v698_v9 = vshll.u32 %v1412_v27, %v683_v53  ;;  %vm701_vm5 = vcmp.lt.s32.totalorder %v682_v52, 1  ;;  %vm582_vm6 = vc.u32 %v1771_v61, %v1774_v62 }
  0xf3   : > { %v685_v10 = vshrl.u32 %v1408_v19, %v684_v1  ;;  %v687_v11 = vshrl.u32 %v1409_v21, %v684_v1  ;;  %v690_v14 = vshrl.u32 %v1410_v23, %v684_v1  ;;  %v693_v17 = vshrl.u32 %v1411_v25, %v684_v1 }
  0xf4   : > { %v583_v18 = vadd.s32 1, %v1775_v63  ;;  %v696_v20 = vshrl.u32 %v1412_v27, %v684_v1  ;;  %vm702_vm7 = vcmp.lt.s32.totalorder %v682_v52, 2  ;;  %v699_v28 = vshrl.u32 %v1413_v35, %v684_v1 }
  0xf5   : > { %v688_v22 = vor.u32 %v687_v11, %v686_v3  ;;  %v691_v24 = vor.u32 %v690_v14, %v689_v4  ;;  %v694_v26 = vor.u32 %v693_v17, %v692_v5  ;;  %vm703_vm8 = vcmp.lt.s32.totalorder %v682_v52, 3 }
  0xf6   : > { %v584_v29 = vsel %vm582_vm6, %v583_v18, %v1775_v63  ;;  %v697_v15 = vor.u32 %v696_v20, %v695_v7  ;;  %vm704_vm9 = vcmp.lt.s32.totalorder %v682_v52, 4  ;;  %v700_v19 = vor.u32 %v699_v28, %v698_v9 }
  0xf7   : > { %v585_v30 = vadd.s32 %v584_v29, %v580_v6  ;;  %v705_v21 = vsel %vm701_vm5, %v685_v10, %v688_v22  ;;  %v706_v23 = vsel %vm704_vm9, %v694_v26, 2102212464  ;;  %v709_v31 = vsel %vm701_vm5, %v688_v22, %v691_v24 }
  0xf8   : > { %v707_v25 = vsel %vm703_vm8, %v691_v24, %v706_v23  ;;  %v710_v32 = vsel %vm704_vm9, %v697_v15, 920167782  ;;  %v713_v27 = vsel %vm701_vm5, %v691_v24, %v694_v26  ;;  %v714_v36 = vsel %vm704_vm9, %v700_v19, 1326507024 }
  0xf9   : > { %v586_v33 = vadd.s32 536870912, %v585_v30  ;;  %v711_v34 = vsel %vm703_vm8, %v694_v26, %v710_v32  ;;  %v708_v35 = vsel %vm702_vm7, %v705_v21, %v707_v25  ;;  %v715_v38 = vsel %vm703_vm8, %v697_v15, %v714_v36 }
  0xfa   : > { %v712_v37 = vsel %vm702_vm7, %v709_v31, %v711_v34  ;;  %v716_v40 = vsel %vm702_vm7, %v713_v27, %v715_v38  ;;  %v724_v46 = vmul.u32 %v717_v58, %v708_v35  ;;  %v581_v63 = vadd.s32 %v1774_v62, %v1771_v61 }
  0xfb   : > { %v587_v39 = vshrl.u32 %v586_v33, 30  ;;  %v1787_v41 = vmul.u32.u64.low %v717_v58, %v712_v37  ;;  %v1788_v42 = vmul.u32.u64.high %v717_v58, %v712_v37, %v1787_v41  ;;  %v491_v3 = vadd.f32 0.0001, %v1713_v8 }
  0xfc   : > { %v1790_v43 = vmul.u32.u64.low %v717_v58, %v716_v40  ;;  %v1791_v44 = vmul.u32.u64.high %v717_v58, %v716_v40, %v1790_v43  ;;  %v635_v28 = vadd.f32 0.0001, %v1718_v13  ;;  %vm1815_vm0 = vcmp.le.f32.partialorder %v669_v2, 0.7853982 }
  0xfd   : > { %v588_v45 = vshll.u32 %v587_v39, 30  ;;  %v727_v48 = vadd.s32 1, %v1788_v42  ;;  %1145 = vrcp.f32 %v491_v3  ;;  %v611_v25 = vsub.s32 4, %v587_v39 }
  0xfe   : > { %vm726_vm10 = vc.u32 %v1791_v44, %v1787_v41  ;;  %v725_v62 = vadd.s32 %v1787_v41, %v1791_v44  ;;  %1147 = vrcp.f32 %v635_v28  ;;  %vm617_vm4 = vweird.f32 %v1749_v57 }
  0xff   : > { %v589_v47 = vsub.s32 %v585_v30, %v588_v45  ;;  %v728_v50 = vsel %vm726_vm10, %v727_v48, %v1788_v42  ;;  %v612_v37 = vsel %vm527_vm13, %v611_v25, %v587_v39  ;;  %vm761_vm8 = vweird.f32 %v1755_v0 }
 0x100   : > { %v729_v51 = vadd.s32 %v728_v50, %v724_v46  ;;  %v614_v41 = vsel %vm1803_vm14, 0, %v612_v37  ;;  %vm777_vm9 = vcmask 1041408  }
 0x101   : > { %v591_v49 = vsub.s32 0, %v589_v47  ;;  %v618_v46 = vand.u32 3, %v614_v41 }
 0x102   : > { %v730_v52 = vadd.s32 536870912, %v729_v51 }
 0x103   : > { %v1029_v53 = vmin.u32 %v591_v49, %v589_v47  ;;  %vm623_vm1 = vcmp.eq.s32.totalorder %v618_v46, 2  ;;  %vm620_vm2 = vcmp.eq.s32.totalorder %v618_v46, 0  ;;  %vm619_vm3 = vcmp.lt.s32.totalorder %v618_v46, 2 }
 0x104   : > { %v731_v55 = vshrl.u32 %v730_v52, 30 }
 0x105   : > { %v593_v54 = vclz %v1029_v53 }
 0x106   : > { %v732_v60 = vshll.u32 %v731_v55, 30  ;;  %v755_v43 = vsub.s32 4, %v731_v55 }
 0x107   : > { %v1030_v56 = vadd.s32 4294967294, %v593_v54  ;;  %v1146_v27 = vpop.eup %1145 }
 0x108   : > { %v733_v58 = vsub.s32 %v729_v51, %v732_v60  ;;  %v493_v38 = vmul.f32 %v1146_v27, %v491_v3  ;;  %v756_v48 = vsel %vm671_vm15, %v755_v43, %v731_v55  ;;  %v1148_v49 = vpop.eup %1147 }
 0x109   : > { %vm1031_vm11 = vcmp.lt.s32.totalorder %v1030_v56, 0  ;;  %v758_v54 = vsel %vm1815_vm0, 0, %v756_v48 }
 0x10a   : > { %v596_v1 = vsel %vm1031_vm11, 0, %v1030_v56  ;;  %v735_v7 = vsub.s32 0, %v733_v58  ;;  %v494_v44 = vsub.f32 2.0, %v493_v38 }
 0x10b   : > { %v597_v4 = vsub.s32 32, %v596_v1  ;;  %v598_v5 = vshll.u32 %v589_v47, %v596_v1  ;;  %v601_v6 = vsub.s32 4294967266, %v596_v1 }
 0x10c   : > { %v1033_v11 = vmin.u32 %v735_v7, %v733_v58  ;;  %v495_v50 = vmul.f32 %v1146_v27, %v494_v44 }
 0x10d   : > { %v599_v9 = vshrl.u32 %v581_v63, %v597_v4  ;;  %v602_v10 = vadd.s32 127, %v601_v6  ;;  %v637_v63 = vmul.f32 %v1148_v49, %v635_v28 }
 0x10e   : > { %v737_v18 = vclz %v1033_v11  ;;  %v501_v55 = vmul.f32 %v495_v50, %v1716_v12 }
 0x10f   : > { %v600_v14 = vor.u32 %v599_v9, %v598_v5  ;;  %v603_v17 = vshll.u32 %v602_v10, 23  ;;  %v638_v6 = vsub.f32 2.0, %v637_v63 }
 0x110   : > { %v1034_v24 = vadd.s32 4294967294, %v737_v18 }
 0x111   : > { %v604_v20 = vor.u32 4788187, %v603_v17  ;;  %v607_v22 = vcvt.s32.f32 %v600_v14  ;;  %v639_v10 = vmul.f32 %v1148_v49, %v638_v6 }
 0x112   : > { %vm1035_vm12 = vcmp.lt.s32.totalorder %v1034_v24, 0 }
 0x113   : > { %v605_v61 = vand.u32 2147483647, %v604_v20  ;;  %v740_v29 = vsel %vm1035_vm12, 0, %v1034_v24  ;;  %v645_v12 = vmul.f32 %v639_v10, %v1722_v16 }
 0x114   : > { %v741_v15 = vsub.s32 32, %v740_v29  ;;  %v742_v30 = vshll.u32 %v733_v58, %v740_v29  ;;  %v745_v19 = vsub.s32 4294967266, %v740_v29  ;;  %v762_v58 = vadd.s32 3, %v758_v54 }
 0x115   : > { %v608_v26 = vmul.f32 %v607_v22, %v605_v61 }
 0x116   : > { %v743_v31 = vshrl.u32 %v725_v62, %v741_v15  ;;  %v746_v32 = vadd.s32 127, %v745_v19  ;;  %v763_v9 = vand.u32 3, %v762_v58 }
 0x117   : > { %v609_v23 = vxor.u32 2147483648, %v608_v26 }
 0x118   : > { %v744_v36 = vor.u32 %v743_v31, %v742_v30  ;;  %v747_v35 = vshll.u32 %v746_v32, 23  ;;  %vm768_vm5 = vcmp.eq.s32.totalorder %v763_v9, 2  ;;  %vm765_vm6 = vcmp.eq.s32.totalorder %v763_v9, 0 }
 0x119   : > { %v610_v33 = vsel %vm527_vm13, %v609_v23, %v608_v26  ;;  %vm764_vm7 = vcmp.lt.s32.totalorder %v763_v9, 2 }
 0x11a   : > { %v613_v34 = vsel %vm1803_vm14, %v1749_v57, %v610_v33  ;;  %v748_v59 = vor.u32 4788187, %v747_v35  ;;  %v751_v40 = vcvt.s32.f32 %v744_v36 }
 0x11b   : > { %1149 = vcosq.f32 %v613_v34 }
 0x11c   : > { %1151 = vsinq.f32 %v613_v34  ;;  %v749_v42 = vand.u32 2147483647, %v748_v59 }
 0x11e   : > { %v752_v45 = vmul.f32 %v751_v40, %v749_v42 }
 0x120   : > { %v753_v39 = vxor.u32 2147483648, %v752_v45 }
 0x122   : > { %v754_v51 = vsel %vm671_vm15, %v753_v39, %v752_v45 }
 0x123   : > { %v757_v52 = vsel %vm1815_vm0, %v1755_v0, %v754_v51 }
 0x124   : > { %1153 = vcosq.f32 %v757_v52 }
 0x125   : > { %v1150_v53 = vpop.eup %1149  ;;  %1155 = vsinq.f32 %v757_v52 }
 0x126   : > { %v1152_v56 = vpop.eup %1151  ;;  %v624_v2 = vxor.u32 2147483648, %v1150_v53 }
 0x127   : > { %v621_v60 = vxor.u32 2147483648, %v1152_v56 }
 0x128   : > { %v625_v1 = vsel %vm623_vm1, %v624_v2, %v1152_v56 }
 0x129   : > { %v622_v3 = vsel %vm620_vm2, %v1150_v53, %v621_v60 }
 0x12a   : > { %v626_v4 = vsel %vm619_vm3, %v622_v3, %v625_v1 }
 0x12b   : > { %v627_v5 = vsel %vm617_vm4, nan, %v626_v4 }
 0x12c   : > { %v628_v7 = vmul.f32 %v627_v5, %v501_v55 }
 0x12e   : > { %v1154_v11 = vpop.eup %1153  ;;  %v629_v61 = vmul.f32 %v628_v7, %v1713_v8 }
 0x12f   : > { %v1156_v14 = vpop.eup %1155  ;;  %v769_v17 = vxor.u32 2147483648, %v1154_v11 }
 0x130   : > { %v766_v18 = vxor.u32 2147483648, %v1156_v14 }
 0x131   : > { %v770_v57 = vsel %vm768_vm5, %v769_v17, %v1156_v14 }
 0x132   : > { %v767_v20 = vsel %vm765_vm6, %v1154_v11, %v766_v18 }
 0x133   : > { %v771_v22 = vsel %vm764_vm7, %v767_v20, %v770_v57 }
 0x134   : > { %v772_v24 = vsel %vm761_vm8, nan, %v771_v22 }
 0x135   : > { %v773_v62 = vmul.f32 %v772_v24, %v645_v12 }
 0x137   : > { %v774_v26 = vmul.f32 %v773_v62, %v1718_v13 }
 0x139   : > { %v775_v28 = vsub.f32 %v629_v61, %v774_v26 }
 0x13b   : > { %v776_v29 = vand.u32 2147483647, %v775_v28 }
 0x13d   : > { %v778_v15 = vsel %vm777_vm9, %v776_v29, 0.0 }
 0x13e   : > { %779 = vadd.xlane.f32.xlu0 %v778_v15 }
 0x1cb   : > { %v780_v30 = vpop.xlane.xlu0 %779 }
 0x1cc   : > { %v781_v16 = vrot.slane %v780_v30, 4 }
 0x1ce   : > { %v782_v19 = vadd.f32 %v781_v16, %v780_v30 }
 0x1d0   : > { %v783_v0 = vrot.slane %v782_v19, 2 }
 0x1d2   : > { %v784_v21 = vadd.f32 %v783_v0, %v782_v19 }
 0x1d4   : > { %v785_v23 = vrot.slane %v784_v21, 1 }
 0x1d6   : > { %v786_v25 = vadd.f32 %v785_v23, %v784_v21 }
 0x1d8   : > { %1050 = vpush %v786_v25 }
 0x209   : > { %s1051_s15 = spop %1050 }
 0x20a   : > { %s788_s7 = smul.f32 0.0009765625, %s1051_s15 }
 0x20c   : > { %v789_v8 = vstv %s788_s7 }
 0x20d   : > { %790 = vst [vmem:[%s470_s18] sm:$0xff] %v789_v8 }
 0x20e   : > { %1323 = shalt.err (!%p1320_p7)
}
 0x20f   : > { %s1324_s0 = scalar_lea.hbm %s1835_s1, 128  ;;  %s1328_s13 = scalar_lea.hbm %s1890_s6, 256 }
 0x210   : > { %p1325_p13 = scmp.ne.s32.totalorder %s1835_s1, %s1324_s0  ;;  %p1329_p11 = scmp.lt.u32.totalorder %s1835_s1, %s1890_s6 }
 0x211   : > { %p1330_p3 = scmp.lt.u32.totalorder %s1328_s13, %s1324_s0  ;;  %p1332_p0 = scmp.lt.u32.totalorder %s1324_s0, %s1835_s1 }
 0x212   : > { %p1326_p1 = pnand %p1325_p13, %p1939_p9 }
 0x213   : > { %p1331_p12 = por %p1330_p3, %p1329_p11 }
 0x214   : > { %p1327_p10 = pneg %p1326_p1 }
 0x215   : > { %p1333_p2 = por %p1332_p0, %p1331_p12 }
 0x217   : > { %p1334_p4 = pnand %p1333_p2, %p1327_p10 }
 0x219   : > { %1337 = shalt.err (!%p1334_p4)
}
 0x21a   : > { %1062 = dma.vmem_to_hbm [thread:$0]  (%p1939_p9), %s1837_s30, 128, %s1835_s1, %s792_s19  }
 0x21b PF: > { %s1940_s25 = sld [smem:[#allocation16_spill]]  ;;  %s1941_s21 = sld [smem:[#allocation21_spill]] }
 0x21c   : > { %s1942_s8 = sld [smem:[#allocation18_spill]] }
 0x221   : > { %s818_s11 = sand.u32 1, %s1940_s25   ;;  %p1943_p5 = scmp.ne.s32.totalorder %s1941_s21, 0 }
 0x222   : > { %p1944_p6 = scmp.ge.s32.totalorder %s1942_s8, 2  ;;  %s819_s9 = scalar_lea.sflag [#allocation4], %s818_s11 }
 0x224   : > { %p1081_p8 = pnand %p1944_p6, %p1943_p5 }
 0x226   : > { %1375 = dma.done.wait (!%p1081_p8), %s819_s9, 128  }
 0x227   : > { %1377 = vsyncadd (!%p1081_p8), %s819_s9, 4294967168  ;;  %s28_s26 = sadd.s32 1, %s1942_s8   ;;  %s1945_s10 = sld [smem:[#allocation20_spill]] }
 0x228   : > { %p25_p7 = scmp.ge.s32.totalorder %s28_s26, 4   ;;  %s1946_s24 = sld [smem:[#allocation17_spill]] }
 0x229   : > { %s1947_s25 = sld [smem:[#allocation19_spill]]  ;;  %s1948_s21 = smov %s1384_s22 }
 0x22a   : > { %s1949_s22 = smov %s1388_s23  ;;  %27 = sbr.rel (!%p25_p7) target bundleno = 14 (0xe), region = 140 }
 0x22d   : > { %s1950_s23 = smov %s1945_s10 }
 0x231   :  { %824 = vsyncpa [#allocation3], 1 }
 0x232   :  { %826 = vsyncpa [#allocation3 + $0x1], 1 }
 0x233   :  { %827 = vsyncpa [#allocation6], 1 }
 0x234   :  { %829 = vsyncpa [#allocation6 + $0x1], 1 }
 0x235   :  { %830 = vsyncpa [#allocation9], 1 }
 0x236   :  { %832 = vsyncpa [#allocation9 + $0x1], 1 }
 0x237   :  { %833 = vsyncpa [#allocation4], 1 }
 0x238   :  { %835 = vsyncpa [#allocation4 + $0x1], 1 }

</bundles_post_ra>
